<compile_context>
chip_gen: v7x
topology: tpu7x:2x2x1
jax: 0.10.0
libtpu: 0.0.40
codegen_flags: <defaults>
</compile_context>

<pallas_src>
import jax
import jax.numpy as jnp
from jax import lax
from jax.experimental import pallas as pl
from jax.experimental.pallas import tpu as pltpu

VMEM_SPEC = pl.BlockSpec(memory_space=pltpu.MemorySpace.VMEM)
SMEM_SPEC = pl.BlockSpec(memory_space=pltpu.MemorySpace.SMEM)


# ----------------------------------------------------------------------------------
# Fused kernel: LSTM (batch=1, PyTorch gate order i,f,g,o) + actor head + critic head
# ----------------------------------------------------------------------------------
def agent_kernel(x_ref, actions_t_ref,
                 w_ih_ref, w_hh_ref, lstm_b_ref, h0_ref, c0_ref,
                 w1ac_ref, b1ac_ref, w2a_ref, b2a_ref, w2c_ref, b2c_ref,
                 scores_ref, values_ref, hT_ref, cT_ref,
                 hs_scr, gx_scr):
    T = x_ref.shape[0]
    H = h0_ref.shape[1]
    M = w2a_ref.shape[0]

    # ---- input projection for ALL timesteps, hoisted out of the recurrence:
    #      (T, D) @ (D, 4H) + b   (bf16 weights, f32 accumulation)
    gx_scr[...] = (jnp.dot(x_ref[...].astype(jnp.bfloat16), w_ih_ref[...],
                           preferred_element_type=jnp.float32)
                   + lstm_b_ref[...])

    # ---- serial recurrence: one (1,H)@(H,4H) MXU push per step, gates/state in f32
    def step(t, carry):
        h, c = carry
        gates = (gx_scr[pl.ds(t, 1), :]
                 + jnp.dot(h.astype(jnp.bfloat16), w_hh_ref[...],
                           preferred_element_type=jnp.float32))            # (1, 4H)
        i = jax.nn.sigmoid(gates[:, 0:H])
        f = jax.nn.sigmoid(gates[:, H:2 * H])
        g = jnp.tanh(gates[:, 2 * H:3 * H])
        o = jax.nn.sigmoid(gates[:, 3 * H:4 * H])
        c_new = f * c + i * g
        h_new = o * jnp.tanh(c_new)
        hs_scr[pl.ds(t, 1), :] = h_new
        return (h_new, c_new)

    h_fin, c_fin = lax.fori_loop(0, T, step, (h0_ref[...], c0_ref[...]), unroll=True)
    hT_ref[...] = h_fin
    cT_ref[...] = c_fin

    # ---- heads run directly on the in-VMEM hidden states (no HBM round-trip)
    obs1 = hs_scr[...].astype(jnp.bfloat16)                                 # (T, H)

    # fused actor-fc1 | critic-fc1 : one (T,H)@(H,2M) matmul, then slice
    h1 = jnp.maximum(
        jnp.dot(obs1, w1ac_ref[...], preferred_element_type=jnp.float32) + b1ac_ref[...],
        0.0)                                                                # (T, 2M)
    h1a = h1[:, :M]
    h1c = h1[:, M:]

    # actor: fc_2, then scores = actor_out @ actions^T  (lane-dense 128-wide output)
    actor_out = (jnp.dot(h1a.astype(jnp.bfloat16), w2a_ref[...],
                         preferred_element_type=jnp.float32) + b2a_ref[...])  # (T, O)
    scores_ref[...] = jnp.dot(actor_out, actions_t_ref[...],
                              preferred_element_type=jnp.float32)           # (T, 128*)

    # critic final Linear(M,1): VPU multiply + lane reduce (no padded MXU matmul)
    v = jnp.sum(h1c * w2c_ref[...], axis=-1, keepdims=True) + b2c_ref[0]    # (T, 1)
    values_ref[...] = jnp.broadcast_to(v, values_ref.shape)                 # lane-dense


# ----------------------------------------------------------------------------------
# Wrapper: single pallas_call for the whole forward pass
# ----------------------------------------------------------------------------------
def agent_forward(params, observations, actions, agent_state):
    h0, c0 = agent_state
    T = observations.shape[0]
    H = h0.shape[1]
    A, O = actions.shape
    A_pad = max(128, ((A + 127) // 128) * 128)

    # pre-transpose + lane-pad the candidate actions: (O, A_pad), cols >= A are zero
    actions_t = jnp.zeros((O, A_pad), jnp.float32).at[:, :A].set(
        actions.T.astype(jnp.float32))

    scores_pad, values_pad, hT, cT = pl.pallas_call(
        agent_kernel,
        out_shape=(jax.ShapeDtypeStruct((T, A_pad), jnp.float32),
                   jax.ShapeDtypeStruct((T, 128), jnp.float32),
                   jax.ShapeDtypeStruct((1, H), jnp.float32),
                   jax.ShapeDtypeStruct((1, H), jnp.float32)),
        in_specs=[VMEM_SPEC] * 12 + [SMEM_SPEC],
        out_specs=(VMEM_SPEC, VMEM_SPEC, VMEM_SPEC, VMEM_SPEC),
        scratch_shapes=[pltpu.VMEM((T, H), jnp.float32),         # hidden states
                        pltpu.VMEM((T, 4 * H), jnp.float32)],    # hoisted x-projection
        compiler_params=pltpu.CompilerParams(vmem_limit_bytes=64 * 1024 * 1024),
    )(observations, actions_t,
      params["w_ih_t"], params["w_hh_t"], params["lstm_b"], h0, c0,
      params["w1ac_t"], params["b1ac"], params["w2a_t"], params["b2a"],
      params["w2c_row"], params["b2c"])

    scores = scores_pad[0, :A]      # (A,)  == actions @ actor_out.squeeze()   (T == 1)
    values = values_pad[0, :1]      # (1,)  == critic_head(obs1).squeeze(0)    (T == 1)
    return scores, values, (hT, cT)
    # TODO(synk): for T > 1 or batched environments, tile T/B with a grid BlockSpec
    # (carry in scratch) and mark the batch axis "parallel" to use both v7x TCs.


# ----------------------------------------------------------------------------------
# Deterministic parameter init (shapes from module __init__; weights in bf16)
# ----------------------------------------------------------------------------------
def init_params(key, D, O, M, H):
    ks = jax.random.split(key, 6)

    def kaiming(k, fan_in, shape):
        return (jax.random.normal(k, shape, jnp.float32)
                * jnp.sqrt(2.0 / fan_in).astype(jnp.float32))

    # LSTM: weight_ih (4H, D), weight_hh (4H, H) stored pre-transposed; biases zero.
    # TODO(synk): orthogonal init approximated with scaled normal (deterministic).
    w_ih_t = (jax.random.normal(ks[0], (D, 4 * H), jnp.float32)
              / jnp.sqrt(float(D))).astype(jnp.bfloat16)
    w_hh_t = (jax.random.normal(ks[1], (H, 4 * H), jnp.float32)
              / jnp.sqrt(float(H))).astype(jnp.bfloat16)
    lstm_b = jnp.zeros((1, 4 * H), jnp.float32)            # b_ih + b_hh (both zero)

    # actor fc1 | critic fc1 fused into one (H, 2M) weight
    w1a_t = kaiming(ks[2], H, (H, M))
    w1c_t = kaiming(ks[4], H, (H, M))
    w1ac_t = jnp.concatenate([w1a_t, w1c_t], axis=1).astype(jnp.bfloat16)   # (H, 2M)
    b1ac = jnp.zeros((1, 2 * M), jnp.float32)

    # actor fc2
    w2a_t = kaiming(ks[3], M, (M, O)).astype(jnp.bfloat16)
    b2a = jnp.zeros((1, O), jnp.float32)

    # critic final Linear(M, 1) kept as a single f32 row (used on the VPU/XLU path)
    w2c_row = kaiming(ks[5], M, (1, M))
    b2c = jnp.zeros((1,), jnp.float32)

    return dict(w_ih_t=w_ih_t, w_hh_t=w_hh_t, lstm_b=lstm_b,
                w1ac_t=w1ac_t, b1ac=b1ac, w2a_t=w2a_t, b2a=b2a,
                w2c_row=w2c_row, b2c=b2c)


# ----------------------------------------------------------------------------------
# Pure-JAX reference (mirrors the bf16-weight / f32-accumulation arithmetic)
# ----------------------------------------------------------------------------------
def reference_forward(params, observations, actions, agent_state):
    h, c = agent_state
    H = h.shape[1]
    M = params["w2a_t"].shape[0]
    f32, bf16 = jnp.float32, jnp.bfloat16

    gx = (jnp.dot(observations.astype(bf16), params["w_ih_t"],
                  preferred_element_type=f32) + params["lstm_b"])
    hs = []
    for t in range(observations.shape[0]):
        gates = gx[t:t + 1] + jnp.dot(h.astype(bf16), params["w_hh_t"],
                                      preferred_element_type=f32)
        i = jax.nn.sigmoid(gates[:, :H]); f = jax.nn.sigmoid(gates[:, H:2 * H])
        g = jnp.tanh(gates[:, 2 * H:3 * H]); o = jax.nn.sigmoid(gates[:, 3 * H:])
        c = f * c + i * g
        h = o * jnp.tanh(c)
        hs.append(h)
    obs1 = jnp.concatenate(hs, axis=0).astype(bf16)

    h1 = jnp.maximum(jnp.dot(obs1, params["w1ac_t"], preferred_element_type=f32)
                     + params["b1ac"], 0.0)
    actor_out = (jnp.dot(h1[:, :M].astype(bf16), params["w2a_t"],
                         preferred_element_type=f32) + params["b2a"])
    scores = actions @ actor_out[0]
    values = (jnp.sum(h1[:, M:] * params["w2c_row"], axis=-1) + params["b2c"][0])[:1]
    return scores, values, (h, c)


if __name__ == "__main__":
    # small shapes consistent with the module (input_dim, output_dim, mlp, lstm hidden)
    D, O, M, H = 128, 128, 256, 128
    T, A = 1, 16        # single LSTM step (intended RL usage), 16 candidate actions

    key = jax.random.PRNGKey(0)
    pkey, okey, akey = jax.random.split(key, 3)
    params = init_params(pkey, D, O, M, H)

    observations = jax.random.normal(okey, (T, D), jnp.float32)
    actions = jax.random.normal(akey, (A, O), jnp.float32)
    agent_state = (jnp.zeros((1, H), jnp.float32), jnp.zeros((1, H), jnp.float32))

    scores, values, (hT, cT) = agent_forward(params, observations, actions, agent_state)
    jax.block_until_ready((scores, values, hT, cT))

    r_scores, r_values, (r_h, r_c) = reference_forward(params, observations, actions,
                                                       agent_state)
    assert scores.shape == (A,) and values.shape == (1,)
    assert jnp.allclose(scores, r_scores, atol=2e-2, rtol=2e-2)
    assert jnp.allclose(values, r_values, atol=2e-2, rtol=2e-2)
    assert jnp.allclose(hT, r_h, atol=2e-3, rtol=2e-3)
    assert jnp.allclose(cT, r_c, atol=2e-3, rtol=2e-3)

    print("KERNEL_OK")
</pallas_src>

<mosaic_0001>
module attributes {stable_mosaic.version = 11 : i64} {
  func.func @agent_kernel(%arg0: memref<1x128xf32, #tpu.memory_space<vmem>>, %arg1: memref<128x128xf32, #tpu.memory_space<vmem>>, %arg2: memref<128x512xbf16, #tpu.memory_space<vmem>>, %arg3: memref<128x512xbf16, #tpu.memory_space<vmem>>, %arg4: memref<1x512xf32, #tpu.memory_space<vmem>>, %arg5: memref<1x128xf32, #tpu.memory_space<vmem>>, %arg6: memref<1x128xf32, #tpu.memory_space<vmem>>, %arg7: memref<128x512xbf16, #tpu.memory_space<vmem>>, %arg8: memref<1x512xf32, #tpu.memory_space<vmem>>, %arg9: memref<256x128xbf16, #tpu.memory_space<vmem>>, %arg10: memref<1x128xf32, #tpu.memory_space<vmem>>, %arg11: memref<1x256xf32, #tpu.memory_space<vmem>>, %arg12: memref<1xf32, #tpu.memory_space<smem>>, %arg13: memref<1x128xf32, #tpu.memory_space<vmem>>, %arg14: memref<1x128xf32, #tpu.memory_space<vmem>>, %arg15: memref<1x128xf32, #tpu.memory_space<vmem>>, %arg16: memref<1x128xf32, #tpu.memory_space<vmem>>, %arg17: memref<1x128xf32, #tpu.memory_space<vmem>>, %arg18: memref<1x512xf32, #tpu.memory_space<vmem>>) attributes {dimension_semantics = [], scalar_prefetch = 0 : i64, scratch_operands = 2 : i64, tpu.core_type = #tpu.core_type<tc>} {
    %c0 = arith.constant 0 : index
    %c0_0 = arith.constant 0 : index
    %0 = vector.load %arg0[%c0, %c0_0] : memref<1x128xf32, #tpu.memory_space<vmem>>, vector<1x128xf32>
    %1 = arith.truncf %0 : vector<1x128xf32> to vector<1x128xbf16>
    %c0_1 = arith.constant 0 : index
    %c0_2 = arith.constant 0 : index
    %2 = vector.load %arg2[%c0_1, %c0_2] : memref<128x512xbf16, #tpu.memory_space<vmem>>, vector<128x512xbf16>
    %cst = arith.constant dense<0.000000e+00> : vector<1x512xf32>
    %3 = tpu.matmul %1, %2, %cst {dimension_numbers = #tpu.dot_dimension_numbers<[1], [0], [0], [1], [0, 0, 1, 1], [], []>} : vector<1x128xbf16>, vector<128x512xbf16>, vector<1x512xf32> -> vector<1x512xf32>
    %c0_3 = arith.constant 0 : index
    %c0_4 = arith.constant 0 : index
    %4 = vector.load %arg4[%c0_3, %c0_4] : memref<1x512xf32, #tpu.memory_space<vmem>>, vector<1x512xf32>
    %5 = arith.addf %3, %4 : vector<1x512xf32>
    %c0_5 = arith.constant 0 : index
    %c0_6 = arith.constant 0 : index
    %6 = vector.load %arg18[%c0_5, %c0_6] : memref<1x512xf32, #tpu.memory_space<vmem>>, vector<1x512xf32>
    tpu.vector_store %arg18[%c0_5, %c0_6], %5 {strides = array<i32>} : memref<1x512xf32, #tpu.memory_space<vmem>>, vector<1x512xf32>,
    %c0_7 = arith.constant 0 : index
    %c0_8 = arith.constant 0 : index
    %7 = vector.load %arg5[%c0_7, %c0_8] : memref<1x128xf32, #tpu.memory_space<vmem>>, vector<1x128xf32>
    %c0_9 = arith.constant 0 : index
    %c0_10 = arith.constant 0 : index
    %8 = vector.load %arg6[%c0_9, %c0_10] : memref<1x128xf32, #tpu.memory_space<vmem>>, vector<1x128xf32>
    %c0_i32 = arith.constant 0 : i32
    %9 = arith.index_cast %c0_i32 : i32 to index
    %c0_11 = arith.constant 0 : index
    %10 = vector.load %arg18[%9, %c0_11] : memref<1x512xf32, #tpu.memory_space<vmem>>, vector<1x512xf32>
    %11 = arith.truncf %7 : vector<1x128xf32> to vector<1x128xbf16>
    %c0_12 = arith.constant 0 : index
    %c0_13 = arith.constant 0 : index
    %12 = vector.load %arg3[%c0_12, %c0_13] : memref<128x512xbf16, #tpu.memory_space<vmem>>, vector<128x512xbf16>
    %cst_14 = arith.constant dense<0.000000e+00> : vector<1x512xf32>
    %13 = tpu.matmul %11, %12, %cst_14 {dimension_numbers = #tpu.dot_dimension_numbers<[1], [0], [0], [1], [0, 0, 1, 1], [], []>} : vector<1x128xbf16>, vector<128x512xbf16>, vector<1x512xf32> -> vector<1x512xf32>
    %14 = arith.addf %10, %13 : vector<1x512xf32>
    %15 = vector.extract_strided_slice %14 {offsets = [0, 0], sizes = [1, 128], strides = [1, 1]} : vector<1x512xf32> to vector<1x128xf32>
    %16 = arith.negf %15 : vector<1x128xf32>
    %17 = math.exp %16 : vector<1x128xf32>
    %cst_15 = arith.constant 1.000000e+00 : f32
    %18 = vector.broadcast %cst_15 : f32 to vector<1x128xf32>
    %19 = arith.addf %18, %17 : vector<1x128xf32>
    %20 = arith.divf %18, %19 : vector<1x128xf32>
    %21 = vector.extract_strided_slice %14 {offsets = [0, 128], sizes = [1, 128], strides = [1, 1]} : vector<1x512xf32> to vector<1x128xf32>
    %22 = arith.negf %21 : vector<1x128xf32>
    %23 = math.exp %22 : vector<1x128xf32>
    %cst_16 = arith.constant 1.000000e+00 : f32
    %24 = vector.broadcast %cst_16 : f32 to vector<1x128xf32>
    %25 = arith.addf %24, %23 : vector<1x128xf32>
    %26 = arith.divf %24, %25 : vector<1x128xf32>
    %27 = vector.extract_strided_slice %14 {offsets = [0, 256], sizes = [1, 128], strides = [1, 1]} : vector<1x512xf32> to vector<1x128xf32>
    %28 = math.tanh %27 : vector<1x128xf32>
    %29 = vector.extract_strided_slice %14 {offsets = [0, 384], sizes = [1, 128], strides = [1, 1]} : vector<1x512xf32> to vector<1x128xf32>
    %30 = arith.negf %29 : vector<1x128xf32>
    %31 = math.exp %30 : vector<1x128xf32>
    %cst_17 = arith.constant 1.000000e+00 : f32
    %32 = vector.broadcast %cst_17 : f32 to vector<1x128xf32>
    %33 = arith.addf %32, %31 : vector<1x128xf32>
    %34 = arith.divf %32, %33 : vector<1x128xf32>
    %35 = arith.mulf %26, %8 : vector<1x128xf32>
    %36 = arith.mulf %20, %28 : vector<1x128xf32>
    %37 = arith.addf %35, %36 : vector<1x128xf32>
    %38 = math.tanh %37 : vector<1x128xf32>
    %39 = arith.mulf %34, %38 : vector<1x128xf32>
    %40 = arith.index_cast %c0_i32 : i32 to index
    %c0_18 = arith.constant 0 : index
    %41 = vector.load %arg17[%40, %c0_18] : memref<1x128xf32, #tpu.memory_space<vmem>>, vector<1x128xf32>
    tpu.vector_store %arg17[%40, %c0_18], %39 {strides = array<i32>} : memref<1x128xf32, #tpu.memory_space<vmem>>, vector<1x128xf32>,
    %c1_i32 = arith.constant 1 : i32
    %c0_19 = arith.constant 0 : index
    %c0_20 = arith.constant 0 : index
    %42 = vector.load %arg15[%c0_19, %c0_20] : memref<1x128xf32, #tpu.memory_space<vmem>>, vector<1x128xf32>
    tpu.vector_store %arg15[%c0_19, %c0_20], %39 {strides = array<i32>} : memref<1x128xf32, #tpu.memory_space<vmem>>, vector<1x128xf32>,
    %c0_21 = arith.constant 0 : index
    %c0_22 = arith.constant 0 : index
    %43 = vector.load %arg16[%c0_21, %c0_22] : memref<1x128xf32, #tpu.memory_space<vmem>>, vector<1x128xf32>
    tpu.vector_store %arg16[%c0_21, %c0_22], %37 {strides = array<i32>} : memref<1x128xf32, #tpu.memory_space<vmem>>, vector<1x128xf32>,
    %c0_23 = arith.constant 0 : index
    %c0_24 = arith.constant 0 : index
    %44 = vector.load %arg17[%c0_23, %c0_24] : memref<1x128xf32, #tpu.memory_space<vmem>>, vector<1x128xf32>
    %45 = arith.truncf %44 : vector<1x128xf32> to vector<1x128xbf16>
    %c0_25 = arith.constant 0 : index
    %c0_26 = arith.constant 0 : index
    %46 = vector.load %arg7[%c0_25, %c0_26] : memref<128x512xbf16, #tpu.memory_space<vmem>>, vector<128x512xbf16>
    %cst_27 = arith.constant dense<0.000000e+00> : vector<1x512xf32>
    %47 = tpu.matmul %45, %46, %cst_27 {dimension_numbers = #tpu.dot_dimension_numbers<[1], [0], [0], [1], [0, 0, 1, 1], [], []>} : vector<1x128xbf16>, vector<128x512xbf16>, vector<1x512xf32> -> vector<1x512xf32>
    %c0_28 = arith.constant 0 : index
    %c0_29 = arith.constant 0 : index
    %48 = vector.load %arg8[%c0_28, %c0_29] : memref<1x512xf32, #tpu.memory_space<vmem>>, vector<1x512xf32>
    %49 = arith.addf %47, %48 : vector<1x512xf32>
    %cst_30 = arith.constant 0.000000e+00 : f32
    %50 = vector.broadcast %cst_30 : f32 to vector<1x512xf32>
    %51 = arith.maximumf %49, %50 : vector<1x512xf32>
    %52 = vector.extract_strided_slice %51 {offsets = [0, 0], sizes = [1, 256], strides = [1, 1]} : vector<1x512xf32> to vector<1x256xf32>
    %53 = vector.extract_strided_slice %51 {offsets = [0, 256], sizes = [1, 256], strides = [1, 1]} : vector<1x512xf32> to vector<1x256xf32>
    %54 = arith.truncf %52 : vector<1x256xf32> to vector<1x256xbf16>
    %c0_31 = arith.constant 0 : index
    %c0_32 = arith.constant 0 : index
    %55 = vector.load %arg9[%c0_31, %c0_32] : memref<256x128xbf16, #tpu.memory_space<vmem>>, vector<256x128xbf16>
    %cst_33 = arith.constant dense<0.000000e+00> : vector<1x128xf32>
    %56 = tpu.matmul %54, %55, %cst_33 {dimension_numbers = #tpu.dot_dimension_numbers<[1], [0], [0], [1], [0, 0, 1, 1], [], []>} : vector<1x256xbf16>, vector<256x128xbf16>, vector<1x128xf32> -> vector<1x128xf32>
    %c0_34 = arith.constant 0 : index
    %c0_35 = arith.constant 0 : index
    %57 = vector.load %arg10[%c0_34, %c0_35] : memref<1x128xf32, #tpu.memory_space<vmem>>, vector<1x128xf32>
    %58 = arith.addf %56, %57 : vector<1x128xf32>
    %c0_36 = arith.constant 0 : index
    %c0_37 = arith.constant 0 : index
    %59 = vector.load %arg1[%c0_36, %c0_37] : memref<128x128xf32, #tpu.memory_space<vmem>>, vector<128x128xf32>
    %cst_38 = arith.constant dense<0.000000e+00> : vector<1x128xf32>
    %60 = tpu.matmul %58, %59, %cst_38 {dimension_numbers = #tpu.dot_dimension_numbers<[1], [0], [0], [1], [0, 0, 1, 1], [], []>} : vector<1x128xf32>, vector<128x128xf32>, vector<1x128xf32> -> vector<1x128xf32>
    %c0_39 = arith.constant 0 : index
    %c0_40 = arith.constant 0 : index
    %61 = vector.load %arg13[%c0_39, %c0_40] : memref<1x128xf32, #tpu.memory_space<vmem>>, vector<1x128xf32>
    tpu.vector_store %arg13[%c0_39, %c0_40], %60 {strides = array<i32>} : memref<1x128xf32, #tpu.memory_space<vmem>>, vector<1x128xf32>,
    %c0_41 = arith.constant 0 : index
    %c0_42 = arith.constant 0 : index
    %62 = vector.load %arg11[%c0_41, %c0_42] : memref<1x256xf32, #tpu.memory_space<vmem>>, vector<1x256xf32>
    %63 = arith.mulf %53, %62 : vector<1x256xf32>
    %cst_43 = arith.constant dense<0.000000e+00> : vector<1xf32>
    %64 = vector.multi_reduction <add>, %63, %cst_43 [1] : vector<1x256xf32> to vector<1xf32>
    %65 = vector.shape_cast %64 : vector<1xf32> to vector<1x1xf32>
    %c0_44 = arith.constant 0 : index
    %66 = memref.load %arg12[%c0_44] : memref<1xf32, #tpu.memory_space<smem>>
    %67 = vector.broadcast %66 : f32 to vector<1x1xf32>
    %68 = arith.addf %65, %67 : vector<1x1xf32>
    %69 = vector.shape_cast %68 : vector<1x1xf32> to vector<1x1xf32>
    %70 = vector.broadcast %69 : vector<1x1xf32> to vector<1x128xf32>
    %c0_45 = arith.constant 0 : index
    %c0_46 = arith.constant 0 : index
    %71 = vector.load %arg14[%c0_45, %c0_46] : memref<1x128xf32, #tpu.memory_space<vmem>>, vector<1x128xf32>
    tpu.vector_store %arg14[%c0_45, %c0_46], %70 {strides = array<i32>} : memref<1x128xf32, #tpu.memory_space<vmem>>, vector<1x128xf32>,
    return
  }
}

</mosaic_0001>

<bundles_post_ra>
// kernel: tpu_custom_call.1
= control target key start
LH: loop header
LB: loop body
LE: loop exit
PB: predicated region body
PF: predicated region fallthrough
CT: control target
= control target key end

     0   :  { %s2657_s0 = inlined_call_operand.hbm [shape: f32[1,128], index: 0, kind: input, shape index: {}]   ;;  %s2658_s1 = inlined_call_operand.hbm [shape: f32[128,128], index: 1, kind: input, shape index: {}]   ;;  %s2659_s2 = inlined_call_operand.hbm [shape: bf16[128,512], index: 2, kind: input, shape index: {}]   ;;  %s2660_s3 = inlined_call_operand.hbm [shape: bf16[128,512], index: 3, kind: input, shape index: {}]   ;;  %s2661_s4 = inlined_call_operand.hbm [shape: f32[1,512], index: 4, kind: input, shape index: {}]   ;;  %s2662_s5 = inlined_call_operand.hbm [shape: f32[1,128], index: 5, kind: input, shape index: {}]   ;;  %s2663_s6 = inlined_call_operand.hbm [shape: f32[1,128], index: 6, kind: input, shape index: {}]   ;;  %s2664_s7 = inlined_call_operand.hbm [shape: bf16[128,512], index: 7, kind: input, shape index: {}]   ;;  %s2665_s8 = inlined_call_operand.hbm [shape: f32[1,512], index: 8, kind: input, shape index: {}]   ;;  %s2666_s9 = inlined_call_operand.hbm [shape: bf16[256,128], index: 9, kind: input, shape index: {}]   ;;  %s2667_s10 = inlined_call_operand.hbm [shape: f32[1,128], index: 10, kind: input, shape index: {}]   ;;  %s2668_s11 = inlined_call_operand.hbm [shape: f32[1,256], index: 11, kind: input, shape index: {}]   ;;  %s2669_s12 = inlined_call_operand.<no memory space> [shape: f32[1], index: 12, kind: input, shape index: {}]   ;;  %s2670_s13 = inlined_call_operand.hbm [shape: f32[1,128], index: 13, kind: output, shape index: {0}]   ;;  %s2671_s14 = inlined_call_operand.hbm [shape: f32[1,128], index: 14, kind: output, shape index: {1}]   ;;  %s2672_s15 = inlined_call_operand.hbm [shape: f32[1,128], index: 15, kind: output, shape index: {2}]   ;;  %s2673_s16 = inlined_call_operand.hbm [shape: f32[1,128], index: 16, kind: output, shape index: {3}]  }
   0x1   :  { %2676 = sst [smem:[#allocation41_spill]] %s2657_s0 }
   0x2   :  { %2677 = sst [smem:[#allocation42_spill]] %s2670_s13 }
   0x3   :  { %23 = vsyncpa [#allocation6], 0 }
   0x4   :  { %24 = vsyncpa [#allocation9], 0 }
   0x5   :  { %25 = vsyncpa [#allocation12], 0 }
   0x6   :  { %26 = vsyncpa [#allocation15], 0 }
   0x7   :  { %27 = vsyncpa [#allocation18], 0 }
   0x8   :  { %28 = vsyncpa [#allocation21], 0 }
   0x9   :  { %29 = vsyncpa [#allocation24], 0 }
   0xa   :  { %30 = vsyncpa [#allocation7], 0 }
   0xb   :  { %31 = vsyncpa [#allocation27], 0 }
   0xc   :  { %32 = vsyncpa [#allocation30], 0  ;;  %s2310_s21 = smov [#allocation8]   ;;  %s1938_s25 = scalar_lea.hbm %s2658_s1, 2048 }
   0xd   :  { %s48_s22 = sshll.u32 %s2310_s21, 4  ;;  %p1939_p0 = scmp.ne.s32.totalorder %s2658_s1, %s1938_s25  ;;  %s49_s22 = int_to_ptr.vmem [resolvable:$true] %s48_s22 }
   0xe   :  { %p1942_p1 = scmp.lt.u32.totalorder %s1938_s25, %s2658_s1 }
  0x10   :  { %p1944_p2 = pnand %p1942_p1, %p1939_p0 }
  0x12   :  { %1947 = shalt.err (!%p1944_p2)
}
  0x13   :  { %s1948_s30 = scalar_lea.vmem %s49_s22, 2048  ;;  %p1953_p4 = scmp.lt.s32.totalorder %s49_s22, %s49_s22 }
  0x14   :  { %p1949_p3 = scmp.ne.s32.totalorder %s49_s22, %s1948_s30  ;;  %p1954_p5 = scmp.lt.s32.totalorder %s1948_s30, %s1948_s30 }
  0x16   :  { %p1955_p6 = por %p1954_p5, %p1953_p4 }
  0x18   :  { %p1956_p7 = pnand %p1955_p6, %p1949_p3 }
  0x1a   :  { %1959 = shalt.err (!%p1956_p7)
}
  0x1b   :  { %s2311_s0 = smov 128   ;;  %s2312_s17 = smov 8  }
  0x1c   :  { %54 = dma.hbm_to_vmem [thread:$0]  %s2658_s1, 2048, %s49_s22, [#allocation9], %s2311_s0, %s2311_s0, %s2312_s17  }
  0x1d   :  { %s2313_s20 = smov [#allocation11]   ;;  %s2314_s23 = smov [#allocation14]  }
  0x1e   :  { %s72_s21 = sshll.u32 %s2313_s20, 4  ;;  %s95_s24 = sshll.u32 %s2314_s23, 4  ;;  %s73_s21 = int_to_ptr.vmem [resolvable:$true] %s72_s21  ;;  %s96_s24 = int_to_ptr.vmem [resolvable:$true] %s95_s24 }
  0x1f   :  { %s1960_s27 = scalar_lea.hbm %s2660_s3, 4096 }
  0x20   :  { %p1961_p8 = scmp.ne.s32.totalorder %s2660_s3, %s1960_s27  ;;  %p1964_p9 = scmp.lt.u32.totalorder %s1960_s27, %s2660_s3 }
  0x22   :  { %p1966_p10 = pnand %p1964_p9, %p1961_p8 }
  0x24   :  { %1969 = shalt.err (!%p1966_p10)
}
  0x25   :  { %s1970_s1 = scalar_lea.vmem %s73_s21, 4096  ;;  %p1975_p12 = scmp.lt.s32.totalorder %s73_s21, %s73_s21 }
  0x26   :  { %p1971_p11 = scmp.ne.s32.totalorder %s73_s21, %s1970_s1  ;;  %p1976_p13 = scmp.lt.s32.totalorder %s1970_s1, %s1970_s1 }
  0x28   :  { %p1977_p0 = por %p1976_p13, %p1975_p12 }
  0x2a   :  { %p1978_p1 = pnand %p1977_p0, %p1971_p11 }
  0x2c   :  { %1981 = shalt.err (!%p1978_p1)
}
  0x2d   :  { %s2315_s22 = smov 256   ;;  %s2316_s0 = smov 16  }
  0x2e   :  { %78 = dma.hbm_to_vmem [thread:$0]  %s2660_s3, 4096, %s73_s21, [#allocation12], %s2315_s22, %s2315_s22, %s2316_s0  }
  0x2f   :  { %s1982_s20 = scalar_lea.hbm %s2662_s5, 16 }
  0x30   :  { %p1983_p2 = scmp.ne.s32.totalorder %s2662_s5, %s1982_s20  ;;  %p1986_p3 = scmp.lt.u32.totalorder %s1982_s20, %s2662_s5 }
  0x32   :  { %p1988_p4 = pnand %p1986_p3, %p1983_p2 }
  0x34   :  { %1991 = shalt.err (!%p1988_p4)
}
  0x35   :  { %s1992_s28 = scalar_lea.vmem %s96_s24, 16  ;;  %s1996_s29 = scalar_lea.vmem %s96_s24, 32 }
  0x36   :  { %p1993_p5 = scmp.ne.s32.totalorder %s96_s24, %s1992_s28  ;;  %p1997_p6 = scmp.lt.s32.totalorder %s96_s24, %s96_s24 }
  0x37   :  { %p1998_p7 = scmp.lt.s32.totalorder %s1996_s29, %s1992_s28 }
  0x39   :  { %p1999_p8 = por %p1998_p7, %p1997_p6 }
  0x3b   :  { %p2000_p9 = pnand %p1999_p8, %p1993_p5 }
  0x3d   :  { %2003 = shalt.err (!%p2000_p9)
}
  0x3e   :  { %98 = dma.hbm_to_vmem [thread:$0]  %s2662_s5, 16, %s96_s24, [#allocation15]  }
  0x3f   :  { %s2317_s30 = smov [#allocation17]   ;;  %s2318_s17 = smov [#allocation20]  }
  0x40   :  { %s114_s1 = sshll.u32 %s2317_s30, 4  ;;  %s136_s18 = sshll.u32 %s2318_s17, 4  ;;  %s115_s1 = int_to_ptr.vmem [resolvable:$true] %s114_s1  ;;  %s137_s18 = int_to_ptr.vmem [resolvable:$true] %s136_s18 }
  0x41   :  { %s2004_s20 = scalar_lea.hbm %s2664_s7, 4096 }
  0x42   :  { %p2005_p10 = scmp.ne.s32.totalorder %s2664_s7, %s2004_s20  ;;  %p2008_p11 = scmp.lt.u32.totalorder %s2004_s20, %s2664_s7 }
  0x44   :  { %p2010_p12 = pnand %p2008_p11, %p2005_p10 }
  0x46   :  { %2013 = shalt.err (!%p2010_p12)
}
  0x47   :  { %s2014_s5 = scalar_lea.vmem %s115_s1, 4096  ;;  %p2019_p0 = scmp.lt.s32.totalorder %s115_s1, %s115_s1 }
  0x48   :  { %p2015_p13 = scmp.ne.s32.totalorder %s115_s1, %s2014_s5  ;;  %p2020_p1 = scmp.lt.s32.totalorder %s2014_s5, %s2014_s5 }
  0x4a   :  { %p2021_p2 = por %p2020_p1, %p2019_p0 }
  0x4c   :  { %p2022_p3 = pnand %p2021_p2, %p2015_p13 }
  0x4e   :  { %2025 = shalt.err (!%p2022_p3)
}
  0x4f   :  { %120 = dma.hbm_to_vmem [thread:$0]  %s2664_s7, 4096, %s115_s1, [#allocation18], %s2315_s22, %s2315_s22, %s2316_s0  }
  0x50   :  { %s2026_s21 = scalar_lea.hbm %s2666_s9, 2048 }
  0x51   :  { %p2027_p4 = scmp.ne.s32.totalorder %s2666_s9, %s2026_s21  ;;  %p2030_p5 = scmp.lt.u32.totalorder %s2026_s21, %s2666_s9 }
  0x53   :  { %p2032_p6 = pnand %p2030_p5, %p2027_p4 }
  0x55   :  { %2035 = shalt.err (!%p2032_p6)
}
  0x56   :  { %s2036_s20 = scalar_lea.vmem %s137_s18, 2048  ;;  %p2041_p8 = scmp.lt.s32.totalorder %s137_s18, %s137_s18 }
  0x57   :  { %p2037_p7 = scmp.ne.s32.totalorder %s137_s18, %s2036_s20  ;;  %p2042_p9 = scmp.lt.s32.totalorder %s2036_s20, %s2036_s20 }
  0x59   :  { %p2043_p10 = por %p2042_p9, %p2041_p8 }
  0x5b   :  { %p2044_p11 = pnand %p2043_p10, %p2037_p7 }
  0x5d   :  { %2047 = shalt.err (!%p2044_p11)
}
  0x5e   :  { %s2319_s7 = smov 64   ;;  %s2320_s1 = smov 4  }
  0x5f   :  { %142 = dma.hbm_to_vmem [thread:$0]  %s2666_s9, 2048, %s137_s18, [#allocation21], %s2319_s7, %s2319_s7, %s2320_s1  }
  0x60   :  { %s2321_s26 = smov [#allocation5]   ;;  %s2322_s5 = smov [#allocation10]  }
  0x61   :  { %s39_s27 = sshll.u32 %s2321_s26, 4  ;;  %s60_s24 = sshll.u32 %s2322_s5, 4  ;;  %s40_s27 = int_to_ptr.vmem [resolvable:$true] %s39_s27  ;;  %s61_s24 = int_to_ptr.vmem [resolvable:$true] %s60_s24 }
  0x62   :  { %s2678_s3 = sld [smem:[#allocation41_spill]] }
  0x68   :  { %s2048_s21 = scalar_lea.hbm %s2678_s3, 16 }
  0x69   :  { %p2049_p12 = scmp.ne.s32.totalorder %s2678_s3, %s2048_s21  ;;  %p2052_p13 = scmp.lt.u32.totalorder %s2048_s21, %s2678_s3 }
  0x6b   :  { %p2054_p0 = pnand %p2052_p13, %p2049_p12 }
  0x6d   :  { %2057 = shalt.err (!%p2054_p0)
}
  0x6e   :  { %s2058_s9 = scalar_lea.vmem %s40_s27, 16  ;;  %s2062_s18 = scalar_lea.vmem %s40_s27, 32 }
  0x6f   :  { %p2059_p1 = scmp.ne.s32.totalorder %s40_s27, %s2058_s9  ;;  %p2063_p2 = scmp.lt.s32.totalorder %s40_s27, %s40_s27 }
  0x70   :  { %p2064_p3 = scmp.lt.s32.totalorder %s2062_s18, %s2058_s9 }
  0x72   :  { %p2065_p4 = por %p2064_p3, %p2063_p2 }
  0x74   :  { %p2066_p5 = pnand %p2065_p4, %p2059_p1 }
  0x76   :  { %2069 = shalt.err (!%p2066_p5)
}
  0x77   :  { %42 = dma.hbm_to_vmem [thread:$0]  %s2678_s3, 16, %s40_s27, [#allocation6]  }
  0x78   :  { %s2070_s25 = scalar_lea.hbm %s2659_s2, 4096 }
  0x79   :  { %p2071_p6 = scmp.ne.s32.totalorder %s2659_s2, %s2070_s25  ;;  %p2074_p7 = scmp.lt.u32.totalorder %s2070_s25, %s2659_s2 }
  0x7b   :  { %p2076_p8 = pnand %p2074_p7, %p2071_p6 }
  0x7d   :  { %2079 = shalt.err (!%p2076_p8)
}
  0x7e   :  { %s2080_s21 = scalar_lea.vmem %s61_s24, 4096  ;;  %p2085_p10 = scmp.lt.s32.totalorder %s61_s24, %s61_s24 }
  0x7f   :  { %p2081_p9 = scmp.ne.s32.totalorder %s61_s24, %s2080_s21  ;;  %p2086_p11 = scmp.lt.s32.totalorder %s2080_s21, %s2080_s21 }
  0x81   :  { %p2087_p12 = por %p2086_p11, %p2085_p10 }
  0x83   :  { %p2088_p13 = pnand %p2087_p12, %p2081_p9 }
  0x85   :  { %2091 = shalt.err (!%p2088_p13)
}
  0x86   :  { %66 = dma.hbm_to_vmem [thread:$0]  %s2659_s2, 4096, %s61_s24, [#allocation9], %s2315_s22, %s2315_s22, %s2316_s0  }
  0x87   :  { %s2323_s30 = smov [#allocation13]   ;;  %s2324_s13 = smov [#allocation16]  }
  0x88   :  { %s85_s17 = sshll.u32 %s2323_s30, 4  ;;  %s105_s19 = sshll.u32 %s2324_s13, 4  ;;  %s86_s17 = int_to_ptr.vmem [resolvable:$true] %s85_s17  ;;  %s106_s19 = int_to_ptr.vmem [resolvable:$true] %s105_s19 }
  0x89   :  { %s2092_s20 = scalar_lea.hbm %s2661_s4, 64 }
  0x8a   :  { %p2093_p0 = scmp.ne.s32.totalorder %s2661_s4, %s2092_s20  ;;  %p2096_p1 = scmp.lt.u32.totalorder %s2092_s20, %s2661_s4 }
  0x8c   :  { %p2098_p2 = pnand %p2096_p1, %p2093_p0 }
  0x8e   :  { %2101 = shalt.err (!%p2098_p2)
}
  0x8f   :  { %s2102_s2 = scalar_lea.vmem %s86_s17, 64  ;;  %p2107_p4 = scmp.lt.s32.totalorder %s86_s17, %s86_s17 }
  0x90   :  { %p2103_p3 = scmp.ne.s32.totalorder %s86_s17, %s2102_s2  ;;  %p2108_p5 = scmp.lt.s32.totalorder %s2102_s2, %s2102_s2 }
  0x92   :  { %p2109_p6 = por %p2108_p5, %p2107_p4 }
  0x94   :  { %p2110_p7 = pnand %p2109_p6, %p2103_p3 }
  0x96   :  { %2113 = shalt.err (!%p2110_p7)
}
  0x97   :  { %88 = dma.hbm_to_vmem [thread:$0]  %s2661_s4, 64, %s86_s17, [#allocation12]  }
  0x98   :  { %s2114_s5 = scalar_lea.hbm %s2663_s6, 16 }
  0x99   :  { %p2115_p8 = scmp.ne.s32.totalorder %s2663_s6, %s2114_s5  ;;  %p2118_p9 = scmp.lt.u32.totalorder %s2114_s5, %s2663_s6 }
  0x9b   :  { %p2120_p10 = pnand %p2118_p9, %p2115_p8 }
  0x9d   :  { %2123 = shalt.err (!%p2120_p10)
}
  0x9e   :  { %s2124_s3 = scalar_lea.vmem %s106_s19, 16  ;;  %s2128_s30 = scalar_lea.vmem %s106_s19, 32 }
  0x9f   :  { %p2125_p11 = scmp.ne.s32.totalorder %s106_s19, %s2124_s3  ;;  %p2129_p12 = scmp.lt.s32.totalorder %s106_s19, %s106_s19 }
  0xa0   :  { %p2130_p13 = scmp.lt.s32.totalorder %s2128_s30, %s2124_s3 }
  0xa2   :  { %p2131_p0 = por %p2130_p13, %p2129_p12 }
  0xa4   :  { %p2132_p1 = pnand %p2131_p0, %p2125_p11 }
  0xa6   :  { %2135 = shalt.err (!%p2132_p1)
}
  0xa7   :  { %108 = dma.hbm_to_vmem [thread:$0]  %s2663_s6, 16, %s106_s19, [#allocation15]  }
  0xa8   :  { %s2325_s13 = smov [#allocation19]   ;;  %s2326_s18 = smov [#allocation22]  }
  0xa9   :  { %s127_s9 = sshll.u32 %s2325_s13, 4  ;;  %s149_s20 = sshll.u32 %s2326_s18, 4  ;;  %s128_s9 = int_to_ptr.vmem [resolvable:$true] %s127_s9  ;;  %s150_s20 = int_to_ptr.vmem [resolvable:$true] %s149_s20 }
  0xaa   :  { %s2136_s23 = scalar_lea.hbm %s2665_s8, 64 }
  0xab   :  { %p2137_p2 = scmp.ne.s32.totalorder %s2665_s8, %s2136_s23  ;;  %p2140_p3 = scmp.lt.u32.totalorder %s2136_s23, %s2665_s8 }
  0xad   :  { %p2142_p4 = pnand %p2140_p3, %p2137_p2 }
  0xaf   :  { %2145 = shalt.err (!%p2142_p4)
}
  0xb0   :  { %s2146_s6 = scalar_lea.vmem %s128_s9, 64  ;;  %p2151_p6 = scmp.lt.s32.totalorder %s128_s9, %s128_s9 }
  0xb1   :  { %p2147_p5 = scmp.ne.s32.totalorder %s128_s9, %s2146_s6  ;;  %p2152_p7 = scmp.lt.s32.totalorder %s2146_s6, %s2146_s6 }
  0xb3   :  { %p2153_p8 = por %p2152_p7, %p2151_p6 }
  0xb5   :  { %p2154_p9 = pnand %p2153_p8, %p2147_p5 }
  0xb7   :  { %2157 = shalt.err (!%p2154_p9)
}
  0xb8   :  { %130 = dma.hbm_to_vmem [thread:$0]  %s2665_s8, 64, %s128_s9, [#allocation18]  }
  0xb9   :  { %s2158_s28 = scalar_lea.hbm %s2667_s10, 16 }
  0xba   :  { %p2159_p10 = scmp.ne.s32.totalorder %s2667_s10, %s2158_s28  ;;  %p2162_p11 = scmp.lt.u32.totalorder %s2158_s28, %s2667_s10 }
  0xbc   :  { %p2164_p12 = pnand %p2162_p11, %p2159_p10 }
  0xbe   :  { %2167 = shalt.err (!%p2164_p12)
}
  0xbf   :  { %s2168_s30 = scalar_lea.vmem %s150_s20, 16  ;;  %s2172_s4 = scalar_lea.vmem %s150_s20, 32 }
  0xc0   :  { %p2169_p13 = scmp.ne.s32.totalorder %s150_s20, %s2168_s30  ;;  %p2173_p0 = scmp.lt.s32.totalorder %s150_s20, %s150_s20 }
  0xc1   :  { %p2174_p1 = scmp.lt.s32.totalorder %s2172_s4, %s2168_s30 }
  0xc3   :  { %p2175_p2 = por %p2174_p1, %p2173_p0 }
  0xc5   :  { %p2176_p3 = pnand %p2175_p2, %p2169_p13 }
  0xc7   :  { %2179 = shalt.err (!%p2176_p3)
}
  0xc8   :  { %152 = dma.hbm_to_vmem [thread:$0]  %s2667_s10, 16, %s150_s20, [#allocation21]  }
  0xc9   :  { %s2327_s13 = smov [#allocation23]   ;;  %s2180_s1 = scalar_lea.hbm %s2668_s11, 32 }
  0xca   :  { %s159_s9 = sshll.u32 %s2327_s13, 4  ;;  %p2181_p4 = scmp.ne.s32.totalorder %s2668_s11, %s2180_s1  ;;  %s160_s9 = int_to_ptr.vmem [resolvable:$true] %s159_s9 }
  0xcb   :  { %p2184_p5 = scmp.lt.u32.totalorder %s2180_s1, %s2668_s11 }
  0xcd   :  { %p2186_p6 = pnand %p2184_p5, %p2181_p4 }
  0xcf   :  { %2189 = shalt.err (!%p2186_p6)
}
  0xd0   :  { %s2190_s0 = scalar_lea.vmem %s160_s9, 32  ;;  %p2195_p8 = scmp.lt.s32.totalorder %s160_s9, %s160_s9 }
  0xd1   :  { %p2191_p7 = scmp.ne.s32.totalorder %s160_s9, %s2190_s0  ;;  %p2196_p9 = scmp.lt.s32.totalorder %s2190_s0, %s2190_s0 }
  0xd3   :  { %p2197_p10 = por %p2196_p9, %p2195_p8 }
  0xd5   :  { %p2198_p11 = pnand %p2197_p10, %p2191_p7 }
  0xd7   :  { %2201 = shalt.err (!%p2198_p11)
}
  0xd8   :  { %162 = dma.hbm_to_vmem [thread:$0]  %s2668_s11, 32, %s160_s9, [#allocation24]  }
  0xd9   :  { %2290 = dma.done.wait [#allocation6], 16  }
  0xda   :  { %2291 = vsyncadd [#allocation6], 4294967280 }
  0xdb   :  { %2292 = dma.done.wait [#allocation9], 6144  }
  0xdc   :  { %2293 = vsyncadd [#allocation9], 4294961152 }
  0xdd   :  { %2294 = dma.done.wait [#allocation12], 4160  }
  0xde   :  { %2295 = vsyncadd [#allocation12], 4294963136 }
  0xdf   :  { %2296 = dma.done.wait [#allocation15], 32  }
  0xe0   :  { %2297 = vsyncadd [#allocation15], 4294967264 }
  0xe1   :  { %2298 = dma.done.wait [#allocation18], 4160  }
  0xe2   :  { %2299 = vsyncadd [#allocation18], 4294963136 }
  0xe3   :  { %2300 = dma.done.wait [#allocation21], 2064  }
  0xe4   :  { %2301 = vsyncadd [#allocation21], 4294965232 }
  0xe5   :  { %2302 = dma.done.wait [#allocation24], 32  }
  0xe6   :  { %2303 = vsyncadd [#allocation24], 4294967264  ;;  %v2328_v0 = vmov 0   ;;  %v1762_v1 = vld [vmem:[#allocation10 + $0x4] ss:$16 sps:$4 sm:$0xff]   ;;  %vm1450_vm1 = vcmask 1040384  }
  0xe7   :  { %450 = vmatprep.mubr.bf16.mxu0 %v2328_v0  ;;  %491 = vmatprep.mubr.bf16.mxu1 %v2328_v0  ;;  %v1764_v2 = vld [vmem:[#allocation10 + $0xc] ss:$16 sps:$4 sm:$0xff]   ;;  %v1766_v3 = vld [vmem:[#allocation10] ss:$16 sps:$4 sm:$0xff]   ;;  %v1767_v4 = vld [vmem:[#allocation10 + $0x8] ss:$16 sps:$4 sm:$0xff]  }
  0xe8   :  { %418 = vmatprep.subr.bf16.mxu0 %v1762_v1  ;;  %459 = vmatprep.subr.bf16.mxu1 %v1764_v2  ;;  %v1768_v5 = vld [vmem:[#allocation10 + $0x24] ss:$16 sps:$4 sm:$0xff]   ;;  %v1770_v6 = vld [vmem:[#allocation10 + $0x2c] ss:$16 sps:$4 sm:$0xff]   ;;  %v1772_v7 = vld [vmem:[#allocation10 + $0x20] ss:$16 sps:$4 sm:$0xff]  }
  0xe9   :  { %419 = vmatpush1.bf16.msra.mxu0 %v1766_v3  ;;  %460 = vmatpush1.bf16.msra.mxu1 %v1767_v4  ;;  %v1773_v8 = vld [vmem:[#allocation10 + $0x28] ss:$16 sps:$4 sm:$0xff]   ;;  %v1774_v9 = vld [vmem:[#allocation10 + $0x44] ss:$16 sps:$4 sm:$0xff]   ;;  %v1776_v10 = vld [vmem:[#allocation10 + $0x4c] ss:$16 sps:$4 sm:$0xff]  }
  0xea   :  { %420 = vmatprep.subr.bf16.mxu0 %v1768_v5  ;;  %461 = vmatprep.subr.bf16.mxu1 %v1770_v6  ;;  %v1778_v11 = vld [vmem:[#allocation10 + $0x40] ss:$16 sps:$4 sm:$0xff]   ;;  %v1779_v12 = vld [vmem:[#allocation10 + $0x48] ss:$16 sps:$4 sm:$0xff]   ;;  %v1780_v13 = vld [vmem:[#allocation10 + $0x64] ss:$16 sps:$4 sm:$0xff]  }
  0xeb   :  { %v1782_v14 = vld [vmem:[#allocation10 + $0x6c] ss:$16 sps:$4 sm:$0xff]   ;;  %v1784_v15 = vld [vmem:[#allocation10 + $0x60] ss:$16 sps:$4 sm:$0xff]   ;;  %v1785_v16 = vld [vmem:[#allocation10 + $0x68] ss:$16 sps:$4 sm:$0xff]  }
  0xec   :  { %v1786_v17 = vld [vmem:[#allocation10 + $0x84] ss:$16 sps:$4 sm:$0xff]   ;;  %v1788_v18 = vld [vmem:[#allocation10 + $0x8c] ss:$16 sps:$4 sm:$0xff]   ;;  %v1790_v19 = vld [vmem:[#allocation10 + $0x80] ss:$16 sps:$4 sm:$0xff]  }
  0xed   :  { %421 = vmatpush1.bf16.msra.mxu0 %v1772_v7  ;;  %462 = vmatpush1.bf16.msra.mxu1 %v1773_v8  ;;  %v1791_v20 = vld [vmem:[#allocation10 + $0x88] ss:$16 sps:$4 sm:$0xff]   ;;  %v1792_v21 = vld [vmem:[#allocation10 + $0xa4] ss:$16 sps:$4 sm:$0xff]   ;;  %v1794_v22 = vld [vmem:[#allocation10 + $0xac] ss:$16 sps:$4 sm:$0xff]  }
  0xee   :  { %422 = vmatprep.subr.bf16.mxu0 %v1774_v9  ;;  %463 = vmatprep.subr.bf16.mxu1 %v1776_v10  ;;  %v1796_v23 = vld [vmem:[#allocation10 + $0xa0] ss:$16 sps:$4 sm:$0xff]   ;;  %v1797_v24 = vld [vmem:[#allocation10 + $0xa8] ss:$16 sps:$4 sm:$0xff]   ;;  %v1798_v25 = vld [vmem:[#allocation10 + $0xc4] ss:$16 sps:$4 sm:$0xff]  }
  0xef   :  { %v1800_v26 = vld [vmem:[#allocation10 + $0xcc] ss:$16 sps:$4 sm:$0xff]   ;;  %v1802_v27 = vld [vmem:[#allocation10 + $0xc0] ss:$16 sps:$4 sm:$0xff]   ;;  %v1803_v28 = vld [vmem:[#allocation10 + $0xc8] ss:$16 sps:$4 sm:$0xff]  }
  0xf0   :  { %v1804_v29 = vld [vmem:[#allocation10 + $0xe4] ss:$16 sps:$4 sm:$0xff]   ;;  %v1806_v30 = vld [vmem:[#allocation10 + $0xec] ss:$16 sps:$4 sm:$0xff]   ;;  %v1808_v31 = vld [vmem:[#allocation10 + $0xe0] ss:$16 sps:$4 sm:$0xff]  }
  0xf1   :  { %423 = vmatpush1.bf16.msra.mxu0 %v1778_v11  ;;  %464 = vmatpush1.bf16.msra.mxu1 %v1779_v12  ;;  %v1809_v32 = vld [vmem:[#allocation10 + $0xe8] ss:$16 sps:$4 sm:$0xff]   ;;  %v202_v33 = vld [vmem:[#allocation5] sm:$0x1]  ;;  %v1812_v34 = vld [vmem:[#allocation11 + $0x4] ss:$16 sps:$4 sm:$0xff]  }
  0xf2   :  { %424 = vmatprep.subr.bf16.mxu0 %v1780_v13  ;;  %465 = vmatprep.subr.bf16.mxu1 %v1782_v14  ;;  %v1815_v35 = vld [vmem:[#allocation11 + $0xc] ss:$16 sps:$4 sm:$0xff]   ;;  %v203_v36 = vpack.c.bf16 %v202_v33, %v202_v33  ;;  %v1810_v37 = vld [vmem:[#allocation11] ss:$16 sps:$4 sm:$0xff]   ;;  %v1813_v38 = vld [vmem:[#allocation11 + $0x8] ss:$16 sps:$4 sm:$0xff]  }
  0xf3   :  { %v1818_v39 = vld [vmem:[#allocation11 + $0x24] ss:$16 sps:$4 sm:$0xff]   ;;  %v1821_v40 = vld [vmem:[#allocation11 + $0x2c] ss:$16 sps:$4 sm:$0xff]   ;;  %v1816_v41 = vld [vmem:[#allocation11 + $0x20] ss:$16 sps:$4 sm:$0xff]  }
  0xf4   :  { %v1819_v42 = vld [vmem:[#allocation11 + $0x28] ss:$16 sps:$4 sm:$0xff]   ;;  %v1824_v43 = vld [vmem:[#allocation11 + $0x44] ss:$16 sps:$4 sm:$0xff]   ;;  %v1827_v44 = vld [vmem:[#allocation11 + $0x4c] ss:$16 sps:$4 sm:$0xff]  }
  0xf5   :  { %425 = vmatpush1.bf16.msra.mxu0 %v1784_v15  ;;  %466 = vmatpush1.bf16.msra.mxu1 %v1785_v16  ;;  %v1822_v45 = vld [vmem:[#allocation11 + $0x40] ss:$16 sps:$4 sm:$0xff]   ;;  %v1825_v46 = vld [vmem:[#allocation11 + $0x48] ss:$16 sps:$4 sm:$0xff]   ;;  %v1830_v47 = vld [vmem:[#allocation11 + $0x64] ss:$16 sps:$4 sm:$0xff]  }
  0xf6   :  { %426 = vmatprep.subr.bf16.mxu0 %v1786_v17  ;;  %467 = vmatprep.subr.bf16.mxu1 %v1788_v18  ;;  %v1833_v48 = vld [vmem:[#allocation11 + $0x6c] ss:$16 sps:$4 sm:$0xff]   ;;  %v1828_v49 = vld [vmem:[#allocation11 + $0x60] ss:$16 sps:$4 sm:$0xff]   ;;  %v1831_v50 = vld [vmem:[#allocation11 + $0x68] ss:$16 sps:$4 sm:$0xff]  }
  0xf7   :  { %v1836_v51 = vld [vmem:[#allocation11 + $0x84] ss:$16 sps:$4 sm:$0xff]   ;;  %v1839_v52 = vld [vmem:[#allocation11 + $0x8c] ss:$16 sps:$4 sm:$0xff]   ;;  %v1834_v53 = vld [vmem:[#allocation11 + $0x80] ss:$16 sps:$4 sm:$0xff]  }
  0xf8   :  { %v1837_v54 = vld [vmem:[#allocation11 + $0x88] ss:$16 sps:$4 sm:$0xff]   ;;  %v1842_v55 = vld [vmem:[#allocation11 + $0xa4] ss:$16 sps:$4 sm:$0xff]   ;;  %v1845_v56 = vld [vmem:[#allocation11 + $0xac] ss:$16 sps:$4 sm:$0xff]  }
  0xf9   :  { %427 = vmatpush1.bf16.msra.mxu0 %v1790_v19  ;;  %468 = vmatpush1.bf16.msra.mxu1 %v1791_v20  ;;  %v1840_v57 = vld [vmem:[#allocation11 + $0xa0] ss:$16 sps:$4 sm:$0xff]   ;;  %v1843_v58 = vld [vmem:[#allocation11 + $0xa8] ss:$16 sps:$4 sm:$0xff]   ;;  %v1848_v59 = vld [vmem:[#allocation11 + $0xc4] ss:$16 sps:$4 sm:$0xff]  }
  0xfa   :  { %428 = vmatprep.subr.bf16.mxu0 %v1792_v21  ;;  %469 = vmatprep.subr.bf16.mxu1 %v1794_v22  ;;  %v1851_v60 = vld [vmem:[#allocation11 + $0xcc] ss:$16 sps:$4 sm:$0xff]   ;;  %v1846_v61 = vld [vmem:[#allocation11 + $0xc0] ss:$16 sps:$4 sm:$0xff]   ;;  %v1849_v62 = vld [vmem:[#allocation11 + $0xc8] ss:$16 sps:$4 sm:$0xff]  }
  0xfb   :  { %v1854_v63 = vld [vmem:[#allocation11 + $0xe4] ss:$16 sps:$4 sm:$0xff]   ;;  %v1857_v1 = vld [vmem:[#allocation11 + $0xec] ss:$16 sps:$4 sm:$0xff]   ;;  %v1852_v2 = vld [vmem:[#allocation11 + $0xe0] ss:$16 sps:$4 sm:$0xff]  }
  0xfc   :  { %v1855_v3 = vld [vmem:[#allocation11 + $0xe8] ss:$16 sps:$4 sm:$0xff]   ;;  %v534_v4 = vld [vmem:[#allocation14] sm:$0x1]  ;;  %v1860_v6 = vld [vmem:[#allocation17 + $0x4] ss:$16 sps:$4 sm:$0xff]  }
  0xfd   :  { %429 = vmatpush1.bf16.msra.mxu0 %v1796_v23  ;;  %470 = vmatpush1.bf16.msra.mxu1 %v1797_v24  ;;  %v537_v5 = vpack.c.bf16 %v534_v4, %v534_v4  ;;  %v1863_v7 = vld [vmem:[#allocation17 + $0xc] ss:$16 sps:$4 sm:$0xff]   ;;  %v1858_v8 = vld [vmem:[#allocation17] ss:$16 sps:$4 sm:$0xff]   ;;  %v1861_v9 = vld [vmem:[#allocation17 + $0x8] ss:$16 sps:$4 sm:$0xff]  }
  0xfe   :  { %430 = vmatprep.subr.bf16.mxu0 %v1798_v25  ;;  %471 = vmatprep.subr.bf16.mxu1 %v1800_v26  ;;  %v1866_v10 = vld [vmem:[#allocation17 + $0x24] ss:$16 sps:$4 sm:$0xff]   ;;  %v1869_v11 = vld [vmem:[#allocation17 + $0x2c] ss:$16 sps:$4 sm:$0xff]   ;;  %v1864_v12 = vld [vmem:[#allocation17 + $0x20] ss:$16 sps:$4 sm:$0xff]  }
  0xff   :  { %v1867_v13 = vld [vmem:[#allocation17 + $0x28] ss:$16 sps:$4 sm:$0xff]   ;;  %v1872_v14 = vld [vmem:[#allocation17 + $0x44] ss:$16 sps:$4 sm:$0xff]   ;;  %v1875_v15 = vld [vmem:[#allocation17 + $0x4c] ss:$16 sps:$4 sm:$0xff]  }
 0x100   :  { %v1870_v16 = vld [vmem:[#allocation17 + $0x40] ss:$16 sps:$4 sm:$0xff]   ;;  %v1878_v17 = vld [vmem:[#allocation17 + $0x64] ss:$16 sps:$4 sm:$0xff]   ;;  %v1881_v18 = vld [vmem:[#allocation17 + $0x6c] ss:$16 sps:$4 sm:$0xff]  }
 0x101   :  { %431 = vmatpush1.bf16.msra.mxu0 %v1802_v27  ;;  %472 = vmatpush1.bf16.msra.mxu1 %v1803_v28  ;;  %v1876_v19 = vld [vmem:[#allocation17 + $0x60] ss:$16 sps:$4 sm:$0xff]   ;;  %v1879_v20 = vld [vmem:[#allocation17 + $0x68] ss:$16 sps:$4 sm:$0xff]   ;;  %v1884_v21 = vld [vmem:[#allocation17 + $0x84] ss:$16 sps:$4 sm:$0xff]  }
 0x102   :  { %432 = vmatprep.subr.bf16.mxu0 %v1804_v29  ;;  %473 = vmatprep.subr.bf16.mxu1 %v1806_v30  ;;  %v1887_v22 = vld [vmem:[#allocation17 + $0x8c] ss:$16 sps:$4 sm:$0xff]   ;;  %v1882_v23 = vld [vmem:[#allocation17 + $0x80] ss:$16 sps:$4 sm:$0xff]   ;;  %v1885_v24 = vld [vmem:[#allocation17 + $0x88] ss:$16 sps:$4 sm:$0xff]  }
 0x103   :  { %v1890_v25 = vld [vmem:[#allocation17 + $0xa4] ss:$16 sps:$4 sm:$0xff]   ;;  %v1893_v26 = vld [vmem:[#allocation17 + $0xac] ss:$16 sps:$4 sm:$0xff]   ;;  %v1888_v27 = vld [vmem:[#allocation17 + $0xa0] ss:$16 sps:$4 sm:$0xff]  }
 0x104   :  { %v1891_v28 = vld [vmem:[#allocation17 + $0xa8] ss:$16 sps:$4 sm:$0xff]   ;;  %v1894_v29 = vld [vmem:[#allocation17 + $0xc0] ss:$16 sps:$4 sm:$0xff]   ;;  %v1896_v30 = vld [vmem:[#allocation17 + $0xc4] ss:$16 sps:$4 sm:$0xff]  }
 0x105   :  { %433 = vmatpush1.bf16.msra.mxu0 %v1808_v31  ;;  %474 = vmatpush1.bf16.msra.mxu1 %v1809_v32  ;;  %v1897_v31 = vld [vmem:[#allocation17 + $0xc8] ss:$16 sps:$4 sm:$0xff]   ;;  %v1899_v32 = vld [vmem:[#allocation17 + $0xcc] ss:$16 sps:$4 sm:$0xff]   ;;  %v1902_v33 = vld [vmem:[#allocation17 + $0xe4] ss:$16 sps:$4 sm:$0xff]  }
 0x106   :  { %730 = vmatprep.subr.bf16.mxu0 %v1812_v34  ;;  %771 = vmatprep.subr.bf16.mxu1 %v1815_v35  ;;  %v1905_v34 = vld [vmem:[#allocation17 + $0xec] ss:$16 sps:$4 sm:$0xff]   ;;  %v1900_v35 = vld [vmem:[#allocation17 + $0xe0] ss:$16 sps:$4 sm:$0xff]   ;;  %vm2331_vm2 = vmmov 0   ;;  %s2333_s19 = smov [#allocation26]  }
 0x107   :  { %s1476_s24 = sshll.u32 %s2333_s19, 4  ;;  %s1477_s24 = int_to_ptr.vmem [resolvable:$true] %s1476_s24 }
 0x108   :  { %451 = vmatmul.mubr.bf16.vlgmr.msra.gmra.mrb[0].mxu0 %v203_v36  ;;  %492 = vmatmul.mubr.bf16.vlgmr.msra.gmra.mrb[0].mxu1 %v203_v36  ;;  %v1903_v36 = vld [vmem:[#allocation17 + $0xe8] ss:$16 sps:$4 sm:$0xff]   ;;  %s2202_s26 = scalar_lea.vmem %s1477_s24, 16  ;;  %s2206_s5 = scalar_lea.vmem %s1477_s24, 32 }
 0x109   :  { %731 = vmatpush1.bf16.msra.mxu0 %v1810_v37  ;;  %772 = vmatpush1.bf16.msra.mxu1 %v1813_v38  ;;  %v1906_v37 = vld [vmem:[#allocation20 + $0x40] sm:$0xff]   ;;  %v398_v38 = vlaneseq  ;;  %p2203_p12 = scmp.ne.s32.totalorder %s1477_s24, %s2202_s26  ;;  %p2207_p13 = scmp.lt.s32.totalorder %s1477_s24, %s1477_s24 }
 0x10a   :  { %732 = vmatprep.subr.bf16.mxu0 %v1818_v39  ;;  %773 = vmatprep.subr.bf16.mxu1 %v1821_v40  ;;  %p2208_p0 = scmp.lt.s32.totalorder %s2206_s5, %s2202_s26 }
 0x10b   :  { %762 = vmatprep.mubr.bf16.mxu0 %v2328_v0  ;;  %803 = vmatprep.mubr.bf16.mxu1 %v2328_v0  ;;  %v2581_v39 = vshrl.u32 %v398_v38, 7  ;;  %vm531_vm0 = vcmp.lt.s32.totalorder %v398_v38, 512 }
 0x10c   :  { %p2209_p1 = por %p2208_p0, %p2207_p13 }
 0x10d   :  { %733 = vmatpush1.bf16.msra.mxu0 %v1816_v41  ;;  %774 = vmatpush1.bf16.msra.mxu1 %v1819_v42  ;;  %v2584_v40 = vsub.s32 0, %v2581_v39  ;;  %v408_v41 = vsub.s32 2, %v2581_v39  ;;  %v236_v42 = vld [vmem:[#allocation13] sm:$0xf] }
 0x10e   :  { %734 = vmatprep.subr.bf16.mxu0 %v1824_v43  ;;  %775 = vmatprep.subr.bf16.mxu1 %v1827_v44  ;;  %v2588_v43 = vsub.s32 1, %v2581_v39  ;;  %v2329_v44 = vmov 1966171168   ;;  %p2210_p2 = pnand %p2209_p1, %p2203_p12 }
 0x111   :  { %735 = vmatpush1.bf16.msra.mxu0 %v1822_v45  ;;  %776 = vmatpush1.bf16.msra.mxu1 %v1825_v46  ;;  %v507_v45 = vunpack.c.l.s4 %v2329_v44  ;;  %v412_v46 = vsub.s32 3, %v2581_v39 }
 0x112   :  { %736 = vmatprep.subr.bf16.mxu0 %v1830_v47  ;;  %777 = vmatprep.subr.bf16.mxu1 %v1833_v48  ;;  %v401_v47 = vrot.slane %v236_v42, %v2584_v40  ;;  %v409_v48 = vrot.slane %v236_v42, %v408_v41 }
 0x115   :  { %737 = vmatpush1.bf16.msra.mxu0 %v1828_v49  ;;  %778 = vmatpush1.bf16.msra.mxu1 %v1831_v50  ;;  %v405_v49 = vrot.slane %v236_v42, %v2588_v43  ;;  %v508_v50 = vunpack.c.0.s8 %v507_v45 }
 0x116   :  { %738 = vmatprep.subr.bf16.mxu0 %v1836_v51  ;;  %779 = vmatprep.subr.bf16.mxu1 %v1839_v52  ;;  %v413_v51 = vrot.slane %v236_v42, %v412_v46 }
 0x119   :  { %739 = vmatpush1.bf16.msra.mxu0 %v1834_v53  ;;  %780 = vmatpush1.bf16.msra.mxu1 %v1837_v54 }
 0x11a   :  { %740 = vmatprep.subr.bf16.mxu0 %v1842_v55  ;;  %781 = vmatprep.subr.bf16.mxu1 %v1845_v56 }
 0x11d   :  { %741 = vmatpush1.bf16.msra.mxu0 %v1840_v57  ;;  %782 = vmatpush1.bf16.msra.mxu1 %v1843_v58 }
 0x11e   :  { %742 = vmatprep.subr.bf16.mxu0 %v1848_v59  ;;  %783 = vmatprep.subr.bf16.mxu1 %v1851_v60  ;;  %v511_v59 = vsub.s32 %v508_v50, %v2581_v39 }
 0x121   :  { %743 = vmatpush1.bf16.msra.mxu0 %v1846_v61  ;;  %784 = vmatpush1.bf16.msra.mxu1 %v1849_v62 }
 0x122   :  { %744 = vmatprep.subr.bf16.mxu0 %v1854_v63  ;;  %785 = vmatprep.subr.bf16.mxu1 %v1857_v1 }
 0x125   :  { %745 = vmatpush1.bf16.msra.mxu0 %v1852_v2  ;;  %786 = vmatpush1.bf16.msra.mxu1 %v1855_v3 }
 0x126   :  { %1092 = vmatprep.subr.bf16.mxu0 %v1860_v6  ;;  %1133 = vmatprep.subr.bf16.mxu1 %v1863_v7 }
 0x128   :  { %763 = vmatmul.mubr.bf16.vlgmr.msra.gmra.mrb[4].mxu0 %v537_v5  ;;  %804 = vmatmul.mubr.bf16.vlgmr.msra.gmra.mrb[4].mxu1 %v537_v5 }
 0x129   :  { %1124 = vmatprep.mubr.bf16.mxu0 %v2328_v0  ;;  %1165 = vmatprep.mubr.bf16.mxu1 %v2328_v0  ;;  %v1873_v0 = vld [vmem:[#allocation17 + $0x48] ss:$16 sps:$4 sm:$0xff]  }
 0x12a   :  { %1093 = vmatpush1.bf16.msra.mxu0 %v1858_v8  ;;  %1134 = vmatpush1.bf16.msra.mxu1 %v1861_v9 }
 0x12b   :  { %1094 = vmatprep.subr.bf16.mxu0 %v1866_v10  ;;  %1135 = vmatprep.subr.bf16.mxu1 %v1869_v11 }
 0x12e   :  { %1095 = vmatpush1.bf16.msra.mxu0 %v1864_v12  ;;  %1136 = vmatpush1.bf16.msra.mxu1 %v1867_v13 }
 0x12f   :  { %1096 = vmatprep.subr.bf16.mxu0 %v1872_v14  ;;  %1137 = vmatprep.subr.bf16.mxu1 %v1875_v15 }
 0x132   :  { %1097 = vmatpush1.bf16.msra.mxu0 %v1870_v16  ;;  %1138 = vmatpush1.bf16.msra.mxu1 %v1873_v0 }
 0x133   :  { %1098 = vmatprep.subr.bf16.mxu0 %v1878_v17  ;;  %1139 = vmatprep.subr.bf16.mxu1 %v1881_v18 }
 0x136   :  { %1099 = vmatpush1.bf16.msra.mxu0 %v1876_v19  ;;  %1140 = vmatpush1.bf16.msra.mxu1 %v1879_v20 }
 0x137   :  { %1100 = vmatprep.subr.bf16.mxu0 %v1884_v21  ;;  %1141 = vmatprep.subr.bf16.mxu1 %v1887_v22 }
 0x13a   :  { %1101 = vmatpush1.bf16.msra.mxu0 %v1882_v23  ;;  %1142 = vmatpush1.bf16.msra.mxu1 %v1885_v24 }
 0x13b   :  { %1102 = vmatprep.subr.bf16.mxu0 %v1890_v25  ;;  %1143 = vmatprep.subr.bf16.mxu1 %v1893_v26 }
 0x13e   :  { %1103 = vmatpush1.bf16.msra.mxu0 %v1888_v27  ;;  %1144 = vmatpush1.bf16.msra.mxu1 %v1891_v28 }
 0x13f   :  { %1104 = vmatprep.subr.bf16.mxu0 %v1896_v30  ;;  %1145 = vmatprep.subr.bf16.mxu1 %v1899_v32 }
 0x142   :  { %1105 = vmatpush1.bf16.msra.mxu0 %v1894_v29  ;;  %1146 = vmatpush1.bf16.msra.mxu1 %v1897_v31 }
 0x143   :  { %1106 = vmatprep.subr.bf16.mxu0 %v1902_v33  ;;  %1147 = vmatprep.subr.bf16.mxu1 %v1905_v34 }
 0x146   :  { %1107 = vmatpush1.bf16.msra.mxu0 %v1900_v35  ;;  %1148 = vmatpush1.bf16.msra.mxu1 %v1903_v36  ;;  %v535_v35 = vld [vmem:[#allocation16] sm:$0x1] }
 0x147   :  { %1637 = vmatprep.subr.bf16.mxu0 %v1906_v37 }
 0x1db   :  { %v452_v52 = vpop.f32.mrb[0].mxu0  ;;  %v493_v53 = vpop.f32.mrb[0].mxu1 }
 0x1dc   :  { %v453_v54 = vadd.f32 %v452_v52, %v401_v47  ;;  %v494_v55 = vadd.f32 %v493_v53, %v409_v48  ;;  %v454_v56 = vpop.f32.mrb[1].mxu0  ;;  %v495_v57 = vpop.f32.mrb[1].mxu1  ;;  %v1908_v53 = vld [vmem:[#allocation20 + $0x48] sm:$0xff]  }
 0x1dd   :  { %v455_v58 = vadd.f32 %v454_v56, %v405_v49  ;;  %v496_v60 = vadd.f32 %v495_v57, %v413_v51  ;;  %v456_v61 = vpop.f32.mrb[2].mxu0  ;;  %v497_v62 = vpop.f32.mrb[2].mxu1  ;;  %v1907_v51 = vld [vmem:[#allocation20] sm:$0xff]   ;;  %v1911_v56 = vld [vmem:[#allocation20 + $0x10] sm:$0xff]   ;;  %v1912_v57 = vld [vmem:[#allocation20 + $0x58] sm:$0xff]  }
 0x1de   :  { %v457_v63 = vpop.f32.mrb[3].mxu0  ;;  %v498_v1 = vpop.f32.mrb[3].mxu1  ;;  %v1916_v61 = vld [vmem:[#allocation20 + $0x68] sm:$0xff]  }
 0x1df   :  { %v504_v2 = vcombine.low %v453_v54, %v455_v58  ;;  %v505_v3 = vcombine.low %v494_v55, %v496_v60  ;;  %v1909_v54 = vld [vmem:[#allocation20 + $0x8] sm:$0xff]   ;;  %v1910_v55 = vld [vmem:[#allocation20 + $0x50] sm:$0xff]   ;;  %v1913_v58 = vld [vmem:[#allocation20 + $0x18] sm:$0xff]  }
 0x1e0   :  { %v1915_v60 = vld [vmem:[#allocation20 + $0x20] sm:$0xff]   ;;  %v1917_v62 = vld [vmem:[#allocation20 + $0x28] sm:$0xff]   ;;  %v1918_v63 = vld [vmem:[#allocation20 + $0x70] sm:$0xff]  }
 0x1e1   :  { %v512_v4 = vrot.slane %v504_v2, %v511_v59  ;;  %v519_v5 = vrot.slane %v505_v3, %v511_v59  ;;  %v1919_v1 = vld [vmem:[#allocation20 + $0x30] sm:$0xff]   ;;  %v1920_v2 = vld [vmem:[#allocation20 + $0x78] sm:$0xff]  }
 0x1e2   :  { %v1921_v3 = vld [vmem:[#allocation20 + $0x38] sm:$0xff]  }
 0x1e3   :  { %v520_v6 = vcombine.low %v512_v4, %v519_v5  ;;  %v910_v4 = vld [vmem:[#allocation19] sm:$0xf] }
 0x1e4   :  { %v1075_v5 = vrot.slane %v910_v4, %v2584_v40 }
 0x1e5   :  { %v527_v7 = vrot.slane %v520_v6, %v511_v59  ;;  %v1083_v6 = vrot.slane %v910_v4, %v408_v41 }
 0x1e7   :  { %533 = vst.msk [vmem:[#allocation3] sm:$0xf] %vm531_vm0, %v527_v7  ;;  %v1079_v7 = vrot.slane %v910_v4, %v2588_v43 }
 0x1ee   :  { %v536_v21 = vld [vmem:[#allocation3] sm:$0xf] }
 0x1fb   :  { %v764_v8 = vpop.f32.mrb[4].mxu0  ;;  %v805_v9 = vpop.f32.mrb[4].mxu1 }
 0x1fc   :  { %v766_v10 = vpop.f32.mrb[5].mxu0  ;;  %v807_v11 = vpop.f32.mrb[5].mxu1 }
 0x1fd   :  { %v816_v12 = vcombine.low %v764_v8, %v766_v10  ;;  %v817_v13 = vcombine.low %v805_v9, %v807_v11  ;;  %v768_v14 = vpop.f32.mrb[6].mxu0  ;;  %v809_v15 = vpop.f32.mrb[6].mxu1  ;;  %v1087_v8 = vrot.slane %v910_v4, %v412_v46  ;;  %v1436_v9 = vld [vmem:[#allocation23] sm:$0x3] }
 0x1fe   :  { %v769_v16 = vpop.f32.mrb[7].mxu0  ;;  %v810_v0 = vpop.f32.mrb[7].mxu1  ;;  %v1445_v41 = vrot.slane %v1436_v9, %v2588_v43  ;;  %v1351_v43 = vld [vmem:[#allocation8 + $0x10] sm:$0xff] }
 0x1ff   :  { %v824_v17 = vrot.slane %v816_v12, %v511_v59  ;;  %v831_v18 = vrot.slane %v817_v13, %v511_v59  ;;  %v1441_v16 = vrot.slane %v1436_v9, %v2584_v40 }
 0x201   :  { %v832_v19 = vcombine.low %v824_v17, %v831_v18 }
 0x203   :  { %v839_v20 = vrot.slane %v832_v19, %v511_v59  ;;  %v1914_v59 = vld [vmem:[#allocation20 + $0x60] sm:$0xff]  }
 0x205   :  { %v841_v22 = vadd.f32 %v839_v20, %v536_v21 }
 0x207   :  { %v1586_v23 = vmul.f32 -1.442695, %v841_v22  ;;  %v849_v24 = vrot.slane %v841_v22, 1  ;;  %v860_v26 = vrot.slane %v841_v22, 3  ;;  %v857_v29 = vrot.slane %v841_v22, 2 }
 0x209   :  { %1922 = vpow2.f32 %v1586_v23  ;;  %v1587_v25 = vmul.f32 -1.442695, %v849_v24  ;;  %v1588_v27 = vmul.f32 -1.442695, %v860_v26 }
 0x20b   :  { %1924 = vpow2.f32 %v1587_v25 }
 0x20c   :  { %1926 = vpow2.f32 %v1588_v27 }
 0x213   :  { %v1923_v28 = vpop.eup %1922 }
 0x214   :  { %v845_v30 = vadd.f32 1.0, %v1923_v28 }
 0x215   :  { %v1925_v31 = vpop.eup %1924 }
 0x216   :  { %1928 = vrcp.f32 %v845_v30  ;;  %v854_v32 = vadd.f32 1.0, %v1925_v31  ;;  %v1927_v33 = vpop.eup %1926  ;;  %v1349_v30 = vld [vmem:[#allocation8] sm:$0xff]  ;;  %v1350_v31 = vld [vmem:[#allocation8 + $0x8] sm:$0xff] }
 0x217   :  { %1930 = vtanh.f32 %v857_v29  ;;  %v865_v38 = vadd.f32 1.0, %v1927_v33  ;;  %v1712_v33 = vpack.c.bf16 %v1350_v31, %v1349_v30 }
 0x218   :  { %1932 = vrcp.f32 %v854_v32  ;;  %v2330_v32 = vmov 0.0|0.0  }
 0x219   :  { %1934 = vrcp.f32 %v865_v38  ;;  %1711 = vmatprep.subr.bf16.mxu1 %v2330_v32 }
 0x220   :  { %v1929_v34 = vpop.eup %1928 }
 0x221   :  { %v1931_v36 = vpop.eup %1930 }
 0x222   :  { %v1933_v37 = vpop.eup %1932  ;;  %v869_v44 = vmul.f32 %v1931_v36, %v1929_v34  ;;  %v1352_v34 = vld [vmem:[#allocation8 + $0x18] sm:$0xff]  ;;  %v1353_v36 = vld [vmem:[#allocation8 + $0x20] sm:$0xff] }
 0x223   :  { %v868_v42 = vmul.f32 %v1933_v37, %v535_v35  ;;  %v1935_v47 = vpop.eup %1934  ;;  %v1715_v35 = vpack.c.bf16 %v1352_v34, %v1351_v43  ;;  %v1354_v37 = vld [vmem:[#allocation8 + $0x28] sm:$0xff] }
 0x224   :  { %v1718_v38 = vpack.c.bf16 %v1354_v37, %v1353_v36 }
 0x225   :  { %v870_v45 = vadd.f32 %v869_v44, %v868_v42  ;;  %v1355_v42 = vld [vmem:[#allocation8 + $0x30] sm:$0xff]  ;;  %v1356_v44 = vld [vmem:[#allocation8 + $0x38] sm:$0xff] }
 0x227   :  { %1936 = vtanh.f32 %v870_v45  ;;  %875 = vst [vmem:[#allocation29] sm:$0x1] %v870_v45  ;;  %v1721_v45 = vpack.c.bf16 %v1356_v44, %v1355_v42 }
 0x231   :  { %v1937_v48 = vpop.eup %1936 }
 0x232   :  { %v872_v49 = vmul.f32 %v1937_v48, %v1935_v47  ;;  %v1357_v47 = vld [vmem:[#allocation8 + $0x40] sm:$0xff]  ;;  %v1358_v48 = vld [vmem:[#allocation8 + $0x48] sm:$0xff] }
 0x234   :  { %873 = vst [vmem:[#allocation2] sm:$0x1] %v872_v49  ;;  %874 = vst [vmem:[#allocation28] sm:$0x1] %v872_v49  ;;  %v1724_v49 = vpack.c.bf16 %v1358_v48, %v1357_v47 }
 0x23b   :  { %v876_v50 = vld [vmem:[#allocation2] sm:$0x1] }
 0x23c   :  { %v877_v52 = vpack.c.bf16 %v876_v50, %v876_v50  ;;  %v1359_v50 = vld [vmem:[#allocation8 + $0x50] sm:$0xff] }
 0x23e   :  { %1125 = vmatmul.mubr.bf16.vlgmr.msra.gmra.mrb[8].mxu0 %v877_v52  ;;  %1166 = vmatmul.mubr.bf16.vlgmr.msra.gmra.mrb[8].mxu1 %v877_v52 }
 0x23f   :  { %1638 = vmatpush3.bf16.msra.mxu0 %v1907_v51  ;;  %1713 = vmatpush3.bf16.msra.mxu1 %v1712_v33  ;;  %v1360_v51 = vld [vmem:[#allocation8 + $0x58] sm:$0xff] }
 0x240   :  { %1639 = vmatprep.subr.bf16.mxu0 %v1908_v53  ;;  %1714 = vmatprep.subr.bf16.mxu1 %v2330_v32  ;;  %v1727_v52 = vpack.c.bf16 %v1360_v51, %v1359_v50  ;;  %v1361_v53 = vld [vmem:[#allocation8 + $0x60] sm:$0xff] }
 0x243   :  { %1640 = vmatpush3.bf16.msra.mxu0 %v1909_v54  ;;  %1716 = vmatpush3.bf16.msra.mxu1 %v1715_v35  ;;  %v1362_v54 = vld [vmem:[#allocation8 + $0x68] sm:$0xff] }
 0x244   :  { %1641 = vmatprep.subr.bf16.mxu0 %v1910_v55  ;;  %1717 = vmatprep.subr.bf16.mxu1 %v2330_v32  ;;  %v1730_v55 = vpack.c.bf16 %v1362_v54, %v1361_v53 }
 0x247   :  { %1642 = vmatpush3.bf16.msra.mxu0 %v1911_v56  ;;  %1719 = vmatpush3.bf16.msra.mxu1 %v1718_v38  ;;  %v1363_v56 = vld [vmem:[#allocation8 + $0x70] sm:$0xff] }
 0x248   :  { %1643 = vmatprep.subr.bf16.mxu0 %v1912_v57  ;;  %1720 = vmatprep.subr.bf16.mxu1 %v2330_v32  ;;  %v1364_v57 = vld [vmem:[#allocation8 + $0x78] sm:$0xff] }
 0x24b   :  { %1644 = vmatpush3.bf16.msra.mxu0 %v1913_v58  ;;  %1722 = vmatpush3.bf16.msra.mxu1 %v1721_v45  ;;  %v1733_v58 = vpack.c.bf16 %v1364_v57, %v1363_v56 }
 0x24c   :  { %1645 = vmatprep.subr.bf16.mxu0 %v1914_v59  ;;  %1723 = vmatprep.subr.bf16.mxu1 %v2330_v32  ;;  %v2332_v59 = vmov 0.0  }
 0x24d   :  { %1708 = vmatprep.mubr.msk.f32.mxu1 %vm2331_vm2, %v2332_v59 }
 0x24f   :  { %1646 = vmatpush3.bf16.msra.mxu0 %v1915_v60  ;;  %1725 = vmatpush3.bf16.msra.mxu1 %v1724_v49  ;;  %v1457_v60 = vstv %s2669_s12 }
 0x250   :  { %1647 = vmatprep.subr.bf16.mxu0 %v1916_v61  ;;  %1726 = vmatprep.subr.bf16.mxu1 %v2330_v32 }
 0x253   :  { %1648 = vmatpush3.bf16.msra.mxu0 %v1917_v62  ;;  %1728 = vmatpush3.bf16.msra.mxu1 %v1727_v52 }
 0x254   :  { %1649 = vmatprep.subr.bf16.mxu0 %v1918_v63  ;;  %1729 = vmatprep.subr.bf16.mxu1 %v2330_v32 }
 0x257   :  { %1650 = vmatpush3.bf16.msra.mxu0 %v1919_v1  ;;  %1731 = vmatpush3.bf16.msra.mxu1 %v1730_v55  ;;  %v1212_v1 = vld [vmem:[#allocation22] sm:$0x1] }
 0x258   :  { %1651 = vmatprep.subr.bf16.mxu0 %v1920_v2  ;;  %1732 = vmatprep.subr.bf16.mxu1 %v2330_v32 }
 0x25b   :  { %1652 = vmatpush3.bf16.msra.mxu0 %v1921_v3  ;;  %1734 = vmatpush3.bf16.msra.mxu1 %v1733_v58 }
 0x311   :  { %v1126_v10 = vpop.f32.mrb[8].mxu0  ;;  %v1167_v11 = vpop.f32.mrb[8].mxu1 }
 0x312   :  { %v1127_v12 = vadd.f32 %v1126_v10, %v1075_v5  ;;  %v1168_v13 = vadd.f32 %v1167_v11, %v1083_v6  ;;  %v1128_v14 = vpop.f32.mrb[9].mxu0  ;;  %v1169_v15 = vpop.f32.mrb[9].mxu1 }
 0x313   :  { %v1129_v0 = vadd.f32 %v1128_v14, %v1079_v7  ;;  %v1170_v17 = vadd.f32 %v1169_v15, %v1087_v8  ;;  %v1130_v18 = vpop.f32.mrb[10].mxu0  ;;  %v1171_v19 = vpop.f32.mrb[10].mxu1 }
 0x314   :  { %v1174_v20 = vmax.f32 %v1127_v12, 0.0  ;;  %v1176_v21 = vmax.f32 %v1168_v13, 0.0  ;;  %v1131_v22 = vpop.f32.mrb[11].mxu0  ;;  %v1172_v39 = vpop.f32.mrb[11].mxu1 }
 0x315   :  { %v1175_v46 = vmax.f32 %v1129_v0, 0.0  ;;  %v1177_v23 = vmax.f32 %v1170_v17, 0.0 }
 0x316   :  { %v1448_v24 = vmul.f32 %v1441_v16, %v1176_v21  ;;  %v1178_v27 = vpack.c.bf16 %v1174_v20, %v1174_v20 }
 0x317   :  { %v1179_v25 = vpack.c.bf16 %v1175_v46, %v1175_v46  ;;  %v1449_v26 = vmul.f32 %v1445_v41, %v1177_v23 }
 0x318   :  { %v1451_v28 = vsel %vm1450_vm1, %v1448_v24, 0.0 }
 0x319   :  { %1341 = vmatprep.mubr.bf16.mxu0 %v1179_v25  ;;  %v1452_v40 = vsel %vm1450_vm1, %v1449_v26, 0.0 }
 0x31a   :  { %1342 = vmatmul.mubr.bf16.vlgmr.msra.gmra.mrb[12].mxu0 %v1178_v27  ;;  %v1453_v29 = vadd.f32 %v1452_v40, %v1451_v28 }
 0x31c   :  { %1454 = vadd.xlane.f32.xlu0 %v1453_v29 }
 0x3a9   :  { %v1455_v61 = vpop.xlane.xlu0 %1454 }
 0x3aa   :  { %v1458_v62 = vadd.f32 %v1457_v60, %v1455_v61 }
 0x3ac   :  { %1459 = vst [vmem:[#allocation26] sm:$0x1] %v1458_v62 }
 0x3ed   :  { %v1653_v63 = vpop.f32.mrb[12].mxu0 }
 0x3ee   :  { %v1654_v2 = vpop.f32.mrb[13].mxu0 }
 0x3ef   :  { %v1655_v3 = vadd.f32 %v1654_v2, %v1653_v63  ;;  %v1656_v4 = vpop.f32.mrb[14].mxu0 }
 0x3f0   :  { %v1657_v5 = vpop.f32.mrb[15].mxu0 }
 0x3f1   :  { %v1344_v6 = vadd.f32 %v1655_v3, %v1212_v1 }
 0x3f3   :  { %1709 = vmatmul.mubr.f32.vlgmr.msra.gmra.mrb[12].mxu1 %v1344_v6 }
 0x3f4   :  { %2213 = shalt.err (!%p2210_p2)
}
 0x3f5   :  { %s2214_s29 = scalar_lea.hbm %s2671_s14, 16 }
 0x3f6   :  { %p2215_p3 = scmp.ne.s32.totalorder %s2671_s14, %s2214_s29  ;;  %p2218_p4 = scmp.lt.u32.totalorder %s2214_s29, %s2671_s14 }
 0x3f8   :  { %p2220_p5 = pnand %p2218_p4, %p2215_p3 }
 0x3fa   :  { %2223 = shalt.err (!%p2220_p5)
}
 0x3fb   :  { %1479 = dma.vmem_to_hbm [thread:$0]  %s1477_s24, 16, %s2671_s14, [#allocation27]  }
 0x3fc   :  { %s2334_s17 = smov [#allocation28]   ;;  %s2335_s9 = smov [#allocation29]  }
 0x3fd   :  { %s1486_s13 = sshll.u32 %s2334_s17, 4  ;;  %s1496_s18 = sshll.u32 %s2335_s9, 4  ;;  %s1487_s13 = int_to_ptr.vmem [resolvable:$true] %s1486_s13  ;;  %s1497_s18 = int_to_ptr.vmem [resolvable:$true] %s1496_s18 }
 0x3fe   :  { %s2224_s7 = scalar_lea.vmem %s1487_s13, 16  ;;  %s2228_s1 = scalar_lea.vmem %s1487_s13, 32 }
 0x3ff   :  { %p2225_p6 = scmp.ne.s32.totalorder %s1487_s13, %s2224_s7  ;;  %p2229_p7 = scmp.lt.s32.totalorder %s1487_s13, %s1487_s13 }
 0x400   :  { %p2230_p8 = scmp.lt.s32.totalorder %s2228_s1, %s2224_s7 }
 0x402   :  { %p2231_p9 = por %p2230_p8, %p2229_p7 }
 0x404   :  { %p2232_p10 = pnand %p2231_p9, %p2225_p6 }
 0x406   :  { %2235 = shalt.err (!%p2232_p10)
}
 0x407   :  { %s2236_s2 = scalar_lea.hbm %s2672_s15, 16 }
 0x408   :  { %p2237_p11 = scmp.ne.s32.totalorder %s2672_s15, %s2236_s2  ;;  %p2240_p12 = scmp.lt.u32.totalorder %s2236_s2, %s2672_s15 }
 0x40a   :  { %p2242_p13 = pnand %p2240_p12, %p2237_p11 }
 0x40c   :  { %2245 = shalt.err (!%p2242_p13)
}
 0x40d   :  { %1489 = dma.vmem_to_hbm [thread:$0]  %s1487_s13, 16, %s2672_s15, [#allocation27]  }
 0x40e   :  { %s2246_s6 = scalar_lea.vmem %s1497_s18, 16  ;;  %s2250_s19 = scalar_lea.vmem %s1497_s18, 32 }
 0x40f   :  { %p2247_p0 = scmp.ne.s32.totalorder %s1497_s18, %s2246_s6  ;;  %p2251_p1 = scmp.lt.s32.totalorder %s1497_s18, %s1497_s18 }
 0x410   :  { %p2252_p2 = scmp.lt.s32.totalorder %s2250_s19, %s2246_s6 }
 0x412   :  { %p2253_p3 = por %p2252_p2, %p2251_p1 }
 0x414   :  { %p2254_p4 = pnand %p2253_p3, %p2247_p0 }
 0x416   :  { %2257 = shalt.err (!%p2254_p4)
}
 0x417   :  { %s2258_s5 = scalar_lea.hbm %s2673_s16, 16 }
 0x418   :  { %p2259_p5 = scmp.ne.s32.totalorder %s2673_s16, %s2258_s5  ;;  %p2262_p6 = scmp.lt.u32.totalorder %s2258_s5, %s2673_s16 }
 0x41a   :  { %p2264_p7 = pnand %p2262_p6, %p2259_p5 }
 0x41c   :  { %2267 = shalt.err (!%p2264_p7)
}
 0x41d   :  { %1499 = dma.vmem_to_hbm [thread:$0]  %s1497_s18, 16, %s2673_s16, [#allocation30]  }
 0x41e   :  { %s2336_s3 = smov [#allocation25]  }
 0x41f   :  { %s1466_s30 = sshll.u32 %s2336_s3, 4  ;;  %s1467_s30 = int_to_ptr.vmem [resolvable:$true] %s1466_s30 }
 0x420   :  { %s2268_s4 = scalar_lea.vmem %s1467_s30, 16  ;;  %s2272_s8 = scalar_lea.vmem %s1467_s30, 32 }
 0x421   :  { %p2269_p8 = scmp.ne.s32.totalorder %s1467_s30, %s2268_s4  ;;  %p2273_p9 = scmp.lt.s32.totalorder %s1467_s30, %s1467_s30 }
 0x422   :  { %p2274_p10 = scmp.lt.s32.totalorder %s2272_s8, %s2268_s4 }
 0x424   :  { %p2275_p11 = por %p2274_p10, %p2273_p9 }
 0x426   :  { %p2276_p12 = pnand %p2275_p11, %p2269_p8 }
 0x4c6   :  { %v1431_v7 = vpop.f32.mrb[12].mxu1 }
 0x4c7   :  { %1435 = vst [vmem:[#allocation25] sm:$0x1] %v1431_v7  ;;  %v1710_v8 = vpop.f32.mrb[13].mxu1 }
 0x4c8   :  { %2279 = shalt.err (!%p2276_p12)
}
 0x4c9   :  { %s2679_s9 = sld [smem:[#allocation42_spill]] }
 0x4cf   :  { %s2280_s7 = scalar_lea.hbm %s2679_s9, 16 }
 0x4d0   :  { %p2281_p13 = scmp.ne.s32.totalorder %s2679_s9, %s2280_s7  ;;  %p2284_p0 = scmp.lt.u32.totalorder %s2280_s7, %s2679_s9 }
 0x4d2   :  { %p2286_p1 = pnand %p2284_p0, %p2281_p13 }
 0x4d4   :  { %2289 = shalt.err (!%p2286_p1)
}
 0x4d5   :  { %1469 = dma.vmem_to_hbm [thread:$0]  %s1467_s30, 16, %s2679_s9, [#allocation7]  }
 0x4d6   :  { %2304 = dma.done.wait [#allocation7], 16  }
 0x4d7   :  { %2305 = vsyncadd [#allocation7], 4294967280 }
 0x4d8   :  { %2306 = dma.done.wait [#allocation27], 32  }
 0x4d9   :  { %2307 = vsyncadd [#allocation27], 4294967264 }
 0x4da   :  { %2308 = dma.done.wait [#allocation30], 16  }
 0x4db   :  { %2309 = vsyncadd [#allocation30], 4294967280 }
 0x4dc   :  { %1512 = vsyncpa [#allocation6], 1 }
 0x4dd   :  { %1513 = vsyncpa [#allocation9], 1 }
 0x4de   :  { %1514 = vsyncpa [#allocation12], 1 }
 0x4df   :  { %1515 = vsyncpa [#allocation15], 1 }
 0x4e0   :  { %1516 = vsyncpa [#allocation18], 1 }
 0x4e1   :  { %1517 = vsyncpa [#allocation21], 1 }
 0x4e2   :  { %1518 = vsyncpa [#allocation24], 1 }
 0x4e3   :  { %1519 = vsyncpa [#allocation7], 1 }
 0x4e4   :  { %1520 = vsyncpa [#allocation27], 1 }
 0x4e5   :  { %1521 = vsyncpa [#allocation30], 1 }

</bundles_post_ra>
